<compile_context>
chip_gen: v7x
topology: tpu7x:2x2x1
jax: 0.10.0
libtpu: 0.0.40
codegen_flags: <defaults>
</compile_context>

<pallas_src>
import functools

import jax
import jax.numpy as jnp
from jax.experimental import pallas as pl
from jax.experimental.pallas import tpu as pltpu

_LANE = 128
_TILE_MULT = 512  # keep big tiles a multiple of 512 (full MXU N-passes / stores)


def _round_up(n, m):
    return ((n + m - 1) // m) * m


def _mlp_kernel(x_ref, consts_ref, w2_ref, b3_ref, o_ref, *, use_bf16_matmul):
    # x: (1, TB) with batch on lanes.
    x = x_ref[...]

    # Packed constants: columns [w1 | b1 | b2 | w3], each (64, 1).
    c = consts_ref[...]                                     # (64, 4)
    w1 = c[:, 0:1]
    b1 = c[:, 1:2]
    b2 = c[:, 2:3]
    w3 = c[:, 3:4]

    # Layer 1: Linear(1, 64) == broadcast outer product on the VPU.
    #   (64, 1) * (1, TB) + (64, 1) -> (64, TB)
    h = jnp.tanh(w1 * x + b1)

    # Layer 2: the only matmul worth the MXU; output N = TB is lane-dense.
    w2 = w2_ref[...]                                        # (64, 64) = W2^T
    if use_bf16_matmul:
        acc = jnp.dot(w2.astype(jnp.bfloat16), h.astype(jnp.bfloat16),
                      preferred_element_type=jnp.float32)
    else:
        acc = jnp.dot(w2, h, preferred_element_type=jnp.float32)
    h2 = jnp.tanh(acc + b2)                                 # (64, TB)

    # Layer 3: Linear(64, 1) == VPU multiply + cross-sublane reduce (XLU),
    # result stays lane-dense as (1, TB).
    y = jnp.sum(w3 * h2, axis=0, keepdims=True)             # (1, TB)
    o_ref[...] = jnp.tanh(y + b3_ref[0]).astype(o_ref.dtype)


def deep_mlp_forward(x, params, *, tile_b=8192, use_bf16_matmul=False):
    """x: (B, 1) float32. params: dict w1,b1,w2,b2,w3,b3 in (in, out) layout."""
    B = x.shape[0]

    # ---- batch tiling ------------------------------------------------------
    b_lane = _round_up(B, _LANE)
    if b_lane >= 2 * _TILE_MULT:
        # Enough work to split: cap the tile so there are >= 2 balanced tiles
        # (keeps both v7x TensorCores busy; neutral on v5e/v6e).
        half = _round_up((b_lane + 1) // 2, _TILE_MULT)
        tile_b = min(max(tile_b, _TILE_MULT), half)
    else:
        # Tiny batch: one lane-aligned tile, no over-padding.
        tile_b = b_lane
    tile_b = max(_LANE, _round_up(tile_b, _LANE))
    n_tiles = (b_lane + tile_b - 1) // tile_b
    B_pad = n_tiles * tile_b

    # ---- lane-dense operands (reshape/transpose done once in the wrapper) --
    x_t = jnp.pad(x.reshape(1, B), ((0, 0), (0, B_pad - B)))        # (1, B_pad)
    consts = jnp.concatenate(
        [params["w1"].T, params["b1"].T, params["b2"].T, params["w3"]], axis=1
    )                                                               # (64, 4)
    w2_t = params["w2"].T                                           # (64, 64)
    b3_s = params["b3"].reshape(1)                                  # (1,) -> SMEM

    # ---- compiler params ---------------------------------------------------
    cp_kwargs = dict(dimension_semantics=("parallel",))
    if tile_b > 8192:
        # v5e scoped-VMEM default is 16 MiB; only needed for very large tiles.
        cp_kwargs["vmem_limit_bytes"] = 64 << 20
    compiler_params = pltpu.CompilerParams(**cp_kwargs)

    kernel = functools.partial(_mlp_kernel, use_bf16_matmul=use_bf16_matmul)

    out_t = pl.pallas_call(
        kernel,
        out_shape=jax.ShapeDtypeStruct((1, B_pad), jnp.float32),
        grid=(n_tiles,),
        in_specs=[
            pl.BlockSpec((1, tile_b), lambda i: (0, i), memory_space=pltpu.VMEM),
            pl.BlockSpec((64, 4), lambda i: (0, 0), memory_space=pltpu.VMEM),
            pl.BlockSpec((64, 64), lambda i: (0, 0), memory_space=pltpu.VMEM),
            pl.BlockSpec((1,), lambda i: (0,), memory_space=pltpu.SMEM),
        ],
        out_specs=pl.BlockSpec((1, tile_b), lambda i: (0, i),
                               memory_space=pltpu.VMEM),
        compiler_params=compiler_params,
    )(x_t, consts, w2_t, b3_s)

    # Drop padded lanes and restore PyTorch's (B, 1) layout.
    return out_t[0, :B].reshape(B, 1)


def init_params(key):
    """Deterministic init mirroring nn.Linear's U(-1/sqrt(fan_in), 1/sqrt(fan_in))."""
    ks = jax.random.split(key, 6)

    def linear(kw, kb, fan_in, fan_out):
        bound = 1.0 / jnp.sqrt(jnp.float32(fan_in))
        w = jax.random.uniform(kw, (fan_in, fan_out), jnp.float32, -bound, bound)
        b = jax.random.uniform(kb, (1, fan_out), jnp.float32, -bound, bound)
        return w, b

    w1, b1 = linear(ks[0], ks[1], 1, 64)
    w2, b2 = linear(ks[2], ks[3], 64, 64)
    w3, b3 = linear(ks[4], ks[5], 64, 1)
    return {"w1": w1, "b1": b1, "w2": w2, "b2": b2, "w3": w3, "b3": b3}


def deep_mlp_reference(x, p):
    h = jnp.tanh(x @ p["w1"] + p["b1"])
    h = jnp.tanh(h @ p["w2"] + p["b2"])
    return jnp.tanh(h @ p["w3"] + p["b3"])


if __name__ == "__main__":
    key = jax.random.PRNGKey(0)
    kx, kp = jax.random.split(key)
    params = init_params(kp)

    # 1) Small-batch check, default f32 path, strict tolerance.
    B = 8
    x = jax.random.normal(kx, (B, 1), jnp.float32)
    out = jax.block_until_ready(jax.jit(deep_mlp_forward)(x, params))
    ref = deep_mlp_reference(x, params)
    assert out.shape == (B, 1)
    assert jnp.allclose(out, ref, atol=1e-5, rtol=1e-5)

    # 2) Multi-tile path (exercises the >=2-tile grid split), f32 + bf16 MXU.
    B2 = 2048
    x2 = jax.random.normal(kx, (B2, 1), jnp.float32)
    ref2 = deep_mlp_reference(x2, params)

    out2 = jax.block_until_ready(
        jax.jit(lambda a, p: deep_mlp_forward(a, p))(x2, params))
    assert out2.shape == (B2, 1)
    assert jnp.allclose(out2, ref2, atol=1e-5, rtol=1e-5)

    out2_bf16 = jax.block_until_ready(
        jax.jit(lambda a, p: deep_mlp_forward(a, p, use_bf16_matmul=True))(x2, params))
    assert jnp.allclose(out2_bf16, ref2, atol=2e-2, rtol=2e-2)

    print("KERNEL_OK")
</pallas_src>

<mosaic_0001>
module attributes {stable_mosaic.version = 11 : i64} {
  func.func @_mlp_kernel(%arg0: i32, %arg1: memref<1x128xf32, #tpu.memory_space<vmem>>, %arg2: memref<64x4xf32, #tpu.memory_space<vmem>>, %arg3: memref<64x64xf32, #tpu.memory_space<vmem>>, %arg4: memref<1xf32, #tpu.memory_space<smem>>, %arg5: memref<1x128xf32, #tpu.memory_space<vmem>>) attributes {dimension_semantics = [#tpu.dimension_semantics<parallel>], iteration_bounds = array<i64: 1>, scalar_prefetch = 0 : i64, scratch_operands = 0 : i64, tpu.core_type = #tpu.core_type<tc>, window_params = [{transform_indices = @transform_0, window_bounds = array<i64: 1, 128>}, {pipeline_mode = #tpu.pipeline_mode<synchronous>, transform_indices = @transform_1, window_bounds = array<i64: 64, 4>}, {pipeline_mode = #tpu.pipeline_mode<synchronous>, transform_indices = @transform_2, window_bounds = array<i64: 64, 64>}, {transform_indices = @transform_3, window_bounds = array<i64: 1>}, {transform_indices = @transform_4, window_bounds = array<i64: 1, 128>}]} {
    %c0 = arith.constant 0 : index
    %c0_0 = arith.constant 0 : index
    %0 = vector.load %arg1[%c0, %c0_0] : memref<1x128xf32, #tpu.memory_space<vmem>>, vector<1x128xf32>
    %c0_1 = arith.constant 0 : index
    %c0_2 = arith.constant 0 : index
    %1 = vector.load %arg2[%c0_1, %c0_2] : memref<64x4xf32, #tpu.memory_space<vmem>>, vector<64x4xf32>
    %2 = vector.extract_strided_slice %1 {offsets = [0, 0], sizes = [64, 1], strides = [1, 1]} : vector<64x4xf32> to vector<64x1xf32>
    %3 = vector.extract_strided_slice %1 {offsets = [0, 1], sizes = [64, 1], strides = [1, 1]} : vector<64x4xf32> to vector<64x1xf32>
    %4 = vector.extract_strided_slice %1 {offsets = [0, 2], sizes = [64, 1], strides = [1, 1]} : vector<64x4xf32> to vector<64x1xf32>
    %5 = vector.extract_strided_slice %1 {offsets = [0, 3], sizes = [64, 1], strides = [1, 1]} : vector<64x4xf32> to vector<64x1xf32>
    %6 = vector.broadcast %2 : vector<64x1xf32> to vector<64x128xf32>
    %7 = vector.broadcast %0 : vector<1x128xf32> to vector<64x128xf32>
    %8 = arith.mulf %6, %7 : vector<64x128xf32>
    %9 = vector.broadcast %3 : vector<64x1xf32> to vector<64x128xf32>
    %10 = arith.addf %8, %9 : vector<64x128xf32>
    %11 = math.tanh %10 : vector<64x128xf32>
    %c0_3 = arith.constant 0 : index
    %c0_4 = arith.constant 0 : index
    %12 = vector.load %arg3[%c0_3, %c0_4] : memref<64x64xf32, #tpu.memory_space<vmem>>, vector<64x64xf32>
    %cst = arith.constant dense<0.000000e+00> : vector<64x128xf32>
    %13 = tpu.matmul %12, %11, %cst {dimension_numbers = #tpu.dot_dimension_numbers<[1], [0], [0], [1], [0, 0, 1, 1], [], []>} : vector<64x64xf32>, vector<64x128xf32>, vector<64x128xf32> -> vector<64x128xf32>
    %14 = vector.broadcast %4 : vector<64x1xf32> to vector<64x128xf32>
    %15 = arith.addf %13, %14 : vector<64x128xf32>
    %16 = math.tanh %15 : vector<64x128xf32>
    %17 = vector.broadcast %5 : vector<64x1xf32> to vector<64x128xf32>
    %18 = arith.mulf %17, %16 : vector<64x128xf32>
    %cst_5 = arith.constant dense<0.000000e+00> : vector<128xf32>
    %19 = vector.multi_reduction <add>, %18, %cst_5 [0] : vector<64x128xf32> to vector<128xf32>
    %20 = vector.shape_cast %19 : vector<128xf32> to vector<1x128xf32>
    %c0_6 = arith.constant 0 : index
    %21 = memref.load %arg4[%c0_6] : memref<1xf32, #tpu.memory_space<smem>>
    %22 = vector.broadcast %21 : f32 to vector<1x128xf32>
    %23 = arith.addf %20, %22 : vector<1x128xf32>
    %24 = math.tanh %23 : vector<1x128xf32>
    %c0_7 = arith.constant 0 : index
    %c0_8 = arith.constant 0 : index
    %25 = vector.load %arg5[%c0_7, %c0_8] : memref<1x128xf32, #tpu.memory_space<vmem>>, vector<1x128xf32>
    tpu.vector_store %arg5[%c0_7, %c0_8], %24 {strides = array<i32>} : memref<1x128xf32, #tpu.memory_space<vmem>>, vector<1x128xf32>,
    return
  }
  func.func @transform_0(%arg0: i32) -> (i32, i32) {
    %c0_i32 = arith.constant 0 : i32
    %c0_i32_0 = arith.constant 0 : i32
    return %c0_i32, %arg0 : i32, i32
  }
  func.func @transform_1(%arg0: i32) -> (i32, i32) {
    %c0_i32 = arith.constant 0 : i32
    %c0_i32_0 = arith.constant 0 : i32
    %c0_i32_1 = arith.constant 0 : i32
    return %c0_i32, %c0_i32_0 : i32, i32
  }
  func.func @transform_2(%arg0: i32) -> (i32, i32) {
    %c0_i32 = arith.constant 0 : i32
    %c0_i32_0 = arith.constant 0 : i32
    %c0_i32_1 = arith.constant 0 : i32
    return %c0_i32, %c0_i32_0 : i32, i32
  }
  func.func @transform_3(%arg0: i32) -> i32 {
    %c0_i32 = arith.constant 0 : i32
    %c0_i32_0 = arith.constant 0 : i32
    return %c0_i32 : i32
  }
  func.func @transform_4(%arg0: i32) -> (i32, i32) {
    %c0_i32 = arith.constant 0 : i32
    %c0_i32_0 = arith.constant 0 : i32
    return %c0_i32, %arg0 : i32, i32
  }
}

</mosaic_0001>

<bundles_post_ra>
// kernel: deep_mlp_forward.1
= control target key start
LH: loop header
LB: loop body
LE: loop exit
PB: predicated region body
PF: predicated region fallthrough
CT: control target
= control target key end

     0   :  { %v498_v0 = vmov 1   ;;  %v499_v4 = vmov 0   ;;  %vm169_vm0 = vcmask 523264   ;;  %v500_v12 = vmov 2   ;;  %s592_s1 = inlined_call_operand.vmem [shape: f32[64,4], index: 1, kind: input, shape index: {}]   ;;  %s593_s2 = inlined_call_operand.vmem [shape: f32[64,64], index: 2, kind: input, shape index: {}]   ;;  %s594_s0 = inlined_call_operand.vmem [shape: f32[1,128], index: 0, kind: input, shape index: {}]   ;;  %s595_s3 = inlined_call_operand.<no memory space> [shape: f32[1], index: 3, kind: input, shape index: {}]   ;;  %s596_s4 = inlined_call_operand.vmem [shape: f32[1,128], index: 4, kind: output, shape index: {}]  }
   0x1   :  { %452 = vset.pattern.permute.xlu0 %v498_v0  ;;  %450 = vset.pattern.permute.xlu1 %v498_v0  ;;  %v21_v1 = vld [vmem:[%s592_s1 + $0x10] sm:$0xff]  ;;  %v19_v2 = vld [vmem:[%s592_s1] sm:$0xff]  ;;  %v20_v3 = vld [vmem:[%s592_s1 + $0x8] sm:$0xff]  ;;  %v501_v13 = vmov 3  }
   0x2   :  { %90 = vperm.xlu0 %452, %v21_v1   ;;  %82 = vperm.xlu1 %450, %v19_v2   ;;  %v22_v5 = vld [vmem:[%s592_s1 + $0x18] sm:$0xff]  ;;  %v24_v6 = vld [vmem:[%s592_s1 + $0x28] sm:$0xff]  ;;  %v23_v7 = vld [vmem:[%s592_s1 + $0x20] sm:$0xff] }
   0x3   :  { %v25_v8 = vld [vmem:[%s592_s1 + $0x30] sm:$0xff]  ;;  %v26_v9 = vld [vmem:[%s592_s1 + $0x38] sm:$0xff]  ;;  %v129_v10 = vld [vmem:[%s593_s2] sm:$0xff] }
   0x4   :  { %v133_v11 = vld [vmem:[%s593_s2 + $0x20] sm:$0xff]  ;;  %410 = vmatprep.mubr.msk.f32.mxu0 %vm169_vm0, %v129_v10  ;;  %v130_v59 = vld [vmem:[%s593_s2 + $0x8] sm:$0xff]  ;;  %v131_v61 = vld [vmem:[%s593_s2 + $0x10] sm:$0xff] }
   0x5   :  { %416 = vmatprep.mubr.msk.f32.mxu1 %vm169_vm0, %v133_v11  ;;  %v369_v16 = vld [vmem:[%s594_s0] ss:$0 sm:$0xff]  ;;  %v134_v60 = vld [vmem:[%s593_s2 + $0x28] sm:$0xff]  ;;  %v135_v62 = vld [vmem:[%s593_s2 + $0x30] sm:$0xff] }
   0x6   :  { %453 = vset.pattern.permute.xlu0 %v499_v4  ;;  %86 = vperm.xlu1 %450, %v20_v3   ;;  %v132_v63 = vld [vmem:[%s593_s2 + $0x18] sm:$0xff] }
   0x7   :  { %29 = vperm.xlu0 %453, %v19_v2  }
   0xa   :  { %451 = vset.pattern.permute.xlu1 %v499_v4 }
   0xb   :  { %34 = vperm.xlu0 %453, %v20_v3   ;;  %44 = vperm.xlu1 %451, %v22_v5  }
   0xf   :  { %39 = vperm.xlu0 %453, %v21_v1   ;;  %454 = vset.pattern.permute.xlu1 %v498_v0 }
  0x10   :  { %94 = vperm.xlu1 %454, %v22_v5  }
  0x13   :  { %54 = vperm.xlu0 %453, %v24_v6  }
  0x14   :  { %455 = vset.pattern.permute.xlu1 %v499_v4 }
  0x15   :  { %49 = vperm.xlu1 %455, %v23_v7  }
  0x17   :  { %59 = vperm.xlu0 %453, %v25_v8  }
  0x19   :  { %456 = vset.pattern.permute.xlu1 %v498_v0 }
  0x1a   :  { %98 = vperm.xlu1 %456, %v23_v7  }
  0x1b   :  { %458 = vset.pattern.permute.xlu0 %v498_v0 }
  0x1c   :  { %106 = vperm.xlu0 %458, %v25_v8  }
  0x1e   :  { %102 = vperm.xlu1 %456, %v24_v6  }
  0x20   :  { %461 = vset.pattern.permute.xlu0 %v500_v12 }
  0x21   :  { %142 = vperm.xlu0 %461, %v20_v3  }
  0x22   :  { %457 = vset.pattern.permute.xlu1 %v499_v4 }
  0x23   :  { %64 = vperm.xlu1 %457, %v26_v9  }
  0x25   :  { %154 = vperm.xlu0 %461, %v23_v7  }
  0x27   :  { %459 = vset.pattern.permute.xlu1 %v498_v0  ;;  %v136_v0 = vld [vmem:[%s593_s2 + $0x38] sm:$0xff] }
  0x28   :  { %110 = vperm.xlu1 %459, %v26_v9  }
  0x29   :  { %162 = vperm.xlu0 %461, %v25_v8  }
  0x2c   :  { %460 = vset.pattern.permute.xlu1 %v500_v12 }
  0x2d   :  { %138 = vperm.xlu1 %460, %v19_v2   ;;  %462 = vset.pattern.permute.xlu0 %v501_v13 }
  0x2e   :  { %308 = vperm.xlu0 %462, %v19_v2  }
  0x31   :  { %146 = vperm.xlu1 %460, %v21_v1  }
  0x32   :  { %320 = vperm.xlu0 %462, %v22_v5  }
  0x35   :  { %150 = vperm.xlu1 %460, %v22_v5  }
  0x36   :  { %328 = vperm.xlu0 %462, %v24_v6  }
  0x39   :  { %158 = vperm.xlu1 %460, %v24_v6  }
  0x3a   :  { %336 = vperm.xlu0 %462, %v26_v9  }
  0x3d   :  { %166 = vperm.xlu1 %460, %v26_v9  }
  0x41   :  { %463 = vset.pattern.permute.xlu1 %v501_v13 }
  0x42   :  { %312 = vperm.xlu1 %463, %v20_v3  }
  0x46   :  { %316 = vperm.xlu1 %463, %v21_v1  }
  0x4a   :  { %324 = vperm.xlu1 %463, %v23_v7  }
  0x4e   :  { %332 = vperm.xlu1 %463, %v25_v8  }
  0x81   :  { %v83_v14 = vpop.permute.xlu1 %82  ;;  %v91_v15 = vpop.permute.xlu0 %90 }
  0x85   :  { %v87_v17 = vpop.permute.xlu1 %86 }
  0x86   :  { %v30_v18 = vpop.permute.xlu0 %29 }
  0x87   :  { %v73_v19 = vmul.f32 %v369_v16, %v30_v18 }
  0x89   :  { %v113_v20 = vadd.f32 %v83_v14, %v73_v19 }
  0x8a   :  { %v35_v21 = vpop.permute.xlu0 %34  ;;  %v45_v22 = vpop.permute.xlu1 %44 }
  0x8b   :  { %v74_v23 = vmul.f32 %v369_v16, %v35_v21  ;;  %464 = vtanh.f32 %v113_v20  ;;  %v76_v25 = vmul.f32 %v369_v16, %v45_v22 }
  0x8d   :  { %v114_v24 = vadd.f32 %v87_v17, %v74_v23 }
  0x8e   :  { %v40_v26 = vpop.permute.xlu0 %39 }
  0x8f   :  { %466 = vtanh.f32 %v114_v24  ;;  %v75_v27 = vmul.f32 %v369_v16, %v40_v26  ;;  %v95_v28 = vpop.permute.xlu1 %94 }
  0x90   :  { %v116_v29 = vadd.f32 %v95_v28, %v76_v25 }
  0x91   :  { %v115_v30 = vadd.f32 %v91_v15, %v75_v27 }
  0x92   :  { %468 = vtanh.f32 %v116_v29  ;;  %v55_v32 = vpop.permute.xlu0 %54 }
  0x93   :  { %470 = vtanh.f32 %v115_v30  ;;  %v78_v40 = vmul.f32 %v369_v16, %v55_v32 }
  0x94   :  { %v50_v31 = vpop.permute.xlu1 %49 }
  0x95   :  { %v465_v33 = vpop.eup %464  ;;  %v77_v35 = vmul.f32 %v369_v16, %v50_v31 }
  0x96   :  { %v60_v41 = vpop.permute.xlu0 %59 }
  0x97   :  { %v79_v48 = vmul.f32 %v369_v16, %v60_v41 }
  0x99   :  { %v467_v34 = vpop.eup %466  ;;  %v99_v36 = vpop.permute.xlu1 %98 }
  0x9a   :  { %v422_v37 = vpack.c.bf16 %v467_v34, %v465_v33  ;;  %v117_v38 = vadd.f32 %v99_v36, %v77_v35 }
  0x9b   :  { %v107_v46 = vpop.permute.xlu0 %106 }
  0x9c   :  { %v469_v39 = vpop.eup %468  ;;  %423 = vmatprep.subr.bf16.mxu0 %v422_v37  ;;  %438 = vmatprep.subr.bf16.mxu1 %v422_v37  ;;  %472 = vtanh.f32 %v117_v38  ;;  %v119_v49 = vadd.f32 %v107_v46, %v79_v48 }
  0x9d   :  { %v471_v42 = vpop.eup %470  ;;  %v103_v43 = vpop.permute.xlu1 %102  ;;  %425 = vmatpush3.bf16.msra.mxu0 %v422_v37  ;;  %442 = vmatpush3.bf16.msra.mxu1 %v422_v37 }
  0x9e   :  { %v118_v44 = vadd.f32 %v103_v43, %v78_v40  ;;  %v426_v45 = vpack.c.bf16 %v469_v39, %v471_v42 }
  0xa0   :  { %474 = vtanh.f32 %v118_v44  ;;  %427 = vmatprep.subr.bf16.mxu0 %v426_v45  ;;  %439 = vmatprep.subr.bf16.mxu1 %v426_v45  ;;  %v143_v4 = vpop.permute.xlu0 %142 }
  0xa1   :  { %429 = vmatpush3.bf16.msra.mxu0 %v426_v45  ;;  %443 = vmatpush3.bf16.msra.mxu1 %v426_v45  ;;  %476 = vtanh.f32 %v119_v49 }
  0xa2   :  { %v65_v47 = vpop.permute.xlu1 %64 }
  0xa3   :  { %v80_v50 = vmul.f32 %v369_v16, %v65_v47 }
  0xa4   :  { %v155_v6 = vpop.permute.xlu0 %154 }
  0xa6   :  { %v473_v53 = vpop.eup %472 }
  0xa7   :  { %v111_v51 = vpop.permute.xlu1 %110 }
  0xa8   :  { %v120_v52 = vadd.f32 %v111_v51, %v80_v50  ;;  %v163_v14 = vpop.permute.xlu0 %162 }
  0xaa   :  { %v475_v54 = vpop.eup %474  ;;  %478 = vtanh.f32 %v120_v52 }
  0xab   :  { %v430_v55 = vpack.c.bf16 %v475_v54, %v473_v53  ;;  %v477_v56 = vpop.eup %476 }
  0xac   :  { %v139_v1 = vpop.permute.xlu1 %138 }
  0xad   :  { %431 = vmatprep.subr.bf16.mxu0 %v430_v55  ;;  %440 = vmatprep.subr.bf16.mxu1 %v430_v55  ;;  %v309_v24 = vpop.permute.xlu0 %308 }
  0xae   :  { %433 = vmatpush3.bf16.msra.mxu0 %v430_v55  ;;  %444 = vmatpush3.bf16.msra.mxu1 %v430_v55 }
  0xb0   :  { %v147_v2 = vpop.permute.xlu1 %146 }
  0xb1   :  { %v321_v31 = vpop.permute.xlu0 %320 }
  0xb4   :  { %v479_v57 = vpop.eup %478  ;;  %v151_v3 = vpop.permute.xlu1 %150 }
  0xb5   :  { %v434_v58 = vpack.c.bf16 %v479_v57, %v477_v56  ;;  %v329_v39 = vpop.permute.xlu0 %328 }
  0xb7   :  { %435 = vmatprep.subr.bf16.mxu0 %v434_v58  ;;  %441 = vmatprep.subr.bf16.mxu1 %v434_v58 }
  0xb8   :  { %437 = vmatpush3.bf16.msra.mxu0 %v434_v58  ;;  %445 = vmatpush3.bf16.msra.mxu1 %v434_v58  ;;  %v159_v5 = vpop.permute.xlu1 %158 }
  0xb9   :  { %v337_v50 = vpop.permute.xlu0 %336 }
  0xbb   :  { %411 = vmatmul.mubr.msk.f32.vlgmr.msra.gmra.mrb[0].mxu0 %vm169_vm0, %v130_v59  ;;  %417 = vmatmul.mubr.msk.f32.vlgmr.msra.gmra.mrb[0].mxu1 %vm169_vm0, %v134_v60 }
  0xbc   :  { %413 = vmatprep.mubr.msk.f32.mxu0 %vm169_vm0, %v131_v61  ;;  %419 = vmatprep.mubr.msk.f32.mxu1 %vm169_vm0, %v135_v62  ;;  %v167_v13 = vpop.permute.xlu1 %166  ;;  %v361_v61 = vstv %s595_s3 }
  0xbf   :  { %414 = vmatmul.mubr.msk.f32.gmra.mrb[2].mxu0 %vm169_vm0, %v132_v63  ;;  %420 = vmatmul.mubr.msk.f32.gmra.mrb[2].mxu1 %vm169_vm0, %v136_v0 }
  0xc1   :  { %v313_v23 = vpop.permute.xlu1 %312 }
  0xc5   :  { %v317_v30 = vpop.permute.xlu1 %316 }
  0xc9   :  { %v325_v38 = vpop.permute.xlu1 %324 }
  0xcd   :  { %v333_v49 = vpop.permute.xlu1 %332 }
 0x18e   :  { %v412_v7 = vpop.f32.mrb[0].mxu0  ;;  %v418_v8 = vpop.f32.mrb[0].mxu1 }
 0x18f   :  { %v266_v9 = vadd.f32 %v412_v7, %v143_v4  ;;  %v260_v10 = vpop.f32.mrb[1].mxu0  ;;  %v280_v11 = vpop.f32.mrb[1].mxu1  ;;  %v286_v22 = vadd.f32 %v418_v8, %v159_v5 }
 0x190   :  { %v261_v12 = vadd.f32 %v260_v10, %v139_v1  ;;  %v281_v21 = vadd.f32 %v280_v11, %v155_v6 }
 0x191   :  { %480 = vtanh.f32 %v266_v9 }
 0x192   :  { %v415_v15 = vpop.f32.mrb[2].mxu0  ;;  %v421_v16 = vpop.f32.mrb[2].mxu1  ;;  %482 = vtanh.f32 %v261_v12 }
 0x193   :  { %v276_v17 = vadd.f32 %v415_v15, %v151_v3  ;;  %v270_v18 = vpop.f32.mrb[3].mxu0  ;;  %v290_v19 = vpop.f32.mrb[3].mxu1  ;;  %v296_v27 = vadd.f32 %v421_v16, %v167_v13 }
 0x194   :  { %v271_v20 = vadd.f32 %v270_v18, %v147_v2  ;;  %v291_v25 = vadd.f32 %v290_v19, %v163_v14 }
 0x195   :  { %484 = vtanh.f32 %v276_v17 }
 0x196   :  { %486 = vtanh.f32 %v271_v20 }
 0x197   :  { %488 = vtanh.f32 %v281_v21 }
 0x198   :  { %490 = vtanh.f32 %v286_v22 }
 0x199   :  { %492 = vtanh.f32 %v291_v25 }
 0x19a   :  { %494 = vtanh.f32 %v296_v27 }
 0x19b   :  { %v481_v26 = vpop.eup %480 }
 0x19c   :  { %v340_v28 = vmul.f32 %v481_v26, %v313_v23  ;;  %v483_v29 = vpop.eup %482 }
 0x19d   :  { %v339_v32 = vmul.f32 %v483_v29, %v309_v24 }
 0x19f   :  { %v485_v33 = vpop.eup %484  ;;  %v347_v34 = vadd.f32 %v340_v28, %v339_v32 }
 0x1a0   :  { %v487_v35 = vpop.eup %486  ;;  %v342_v41 = vmul.f32 %v485_v33, %v321_v31 }
 0x1a1   :  { %v341_v36 = vmul.f32 %v487_v35, %v317_v30  ;;  %v489_v37 = vpop.eup %488 }
 0x1a2   :  { %v491_v42 = vpop.eup %490  ;;  %v343_v44 = vmul.f32 %v489_v37, %v325_v38 }
 0x1a3   :  { %v348_v40 = vadd.f32 %v347_v34, %v341_v36  ;;  %v493_v45 = vpop.eup %492  ;;  %v344_v47 = vmul.f32 %v491_v42, %v329_v39 }
 0x1a4   :  { %v495_v48 = vpop.eup %494  ;;  %v345_v52 = vmul.f32 %v493_v45, %v333_v49 }
 0x1a5   :  { %v349_v43 = vadd.f32 %v348_v40, %v342_v41  ;;  %v346_v54 = vmul.f32 %v495_v48, %v337_v50 }
 0x1a7   :  { %v350_v46 = vadd.f32 %v349_v43, %v343_v44 }
 0x1a9   :  { %v351_v51 = vadd.f32 %v350_v46, %v344_v47 }
 0x1ab   :  { %v352_v53 = vadd.f32 %v351_v51, %v345_v52 }
 0x1ad   :  { %v353_v55 = vadd.f32 %v352_v53, %v346_v54 }
 0x1af   :  { %v354_v56 = vrot.slane %v353_v55, 4 }
 0x1b1   :  { %v355_v57 = vadd.f32 %v354_v56, %v353_v55 }
 0x1b3   :  { %v356_v58 = vrot.slane %v355_v57, 2 }
 0x1b5   :  { %v357_v59 = vadd.f32 %v356_v58, %v355_v57 }
 0x1b7   :  { %v358_v60 = vrot.slane %v357_v59, 1 }
 0x1b9   :  { %v359_v62 = vadd.f32 %v358_v60, %v357_v59 }
 0x1bb   :  { %v362_v63 = vadd.f32 %v361_v61, %v359_v62 }
 0x1bd   :  { %496 = vtanh.f32 %v362_v63 }
 0x1c7   :  { %v497_v0 = vpop.eup %496 }
 0x1c8   :  { %364 = vst [vmem:[%s596_s4] sm:$0x1] %v497_v0 }

</bundles_post_ra>
